<compile_context>
chip_gen: v7x
topology: tpu7x:2x2x1
jax: 0.10.0
libtpu: 0.0.40
codegen_flags: <defaults>
</compile_context>

<pallas_src>
import functools

import jax
import jax.numpy as jnp
from jax.experimental import pallas as pl
from jax.experimental.pallas import tpu as pltpu

jax.config.update("jax_default_matmul_precision", "highest")


# --------------------------------------------------------------------------
# Kernel
# --------------------------------------------------------------------------
def _make_kernel(s_total, sc):
    """Online-softmax attention-pool kernel over S chunks of length `sc`."""
    masked = (s_total % sc) != 0  # static: only trace mask code if needed

    def kernel(x_ref, qk_ref, out_ref, m_ref, l_ref, acc_ref):
        # x_ref  : (bt, sc, F)   current batch block / sequence chunk
        # qk_ref : (1, F)        pre-folded, pre-scaled query (f32)
        # out_ref: (bt, F)       output block (resident across the S axis)
        # m_ref  : (bt, 1) f32   running max       (scratch)
        # l_ref  : (bt, 1) f32   running denom     (scratch)
        # acc_ref: (bt, F) f32   running numerator (scratch)
        s_idx = pl.program_id(1)

        @pl.when(s_idx == 0)
        def _():
            m_ref[...] = jnp.full(m_ref.shape, -jnp.inf, m_ref.dtype)
            l_ref[...] = jnp.zeros(l_ref.shape, l_ref.dtype)
            acc_ref[...] = jnp.zeros(acc_ref.shape, acc_ref.dtype)

        x = x_ref[...]                                   # (bt, sc, F)
        qk = qk_ref[...]                                 # (1, F) f32

        if masked:
            # Partial last S chunk: zero out-of-range rows so padded garbage
            # can never reach the accumulators.
            base = s_idx * sc
            row = base + jax.lax.broadcasted_iota(jnp.int32, (1, sc, 1), 1)
            x = jnp.where(row < s_total, x, 0.0)

        # prod[b, s] = sum_f x[b, s, f] * qk[f]   (VPU mul + lane reduction;
        # a rank-1 contraction maps poorly onto the MXU, so keep it vector.)
        prod = jnp.sum(x * qk[None], axis=-1)            # (bt, sc) f32

        if masked:
            base = s_idx * sc
            col = base + jax.lax.broadcasted_iota(jnp.int32, (1, sc), 1)
            prod = jnp.where(col < s_total, prod, -jnp.inf)

        # Online softmax over the sequence axis (dim=1 of the torch (B,S)).
        m_prev = m_ref[...]                               # (bt, 1)
        m_new = jnp.maximum(m_prev, jnp.max(prod, axis=-1, keepdims=True))
        alpha = jnp.exp(m_prev - m_new)                   # (bt, 1)
        p = jnp.exp(prod - m_new)                         # (bt, sc)
        l_ref[...] = alpha * l_ref[...] + jnp.sum(p, axis=-1, keepdims=True)
        acc_ref[...] = alpha * acc_ref[...] + jnp.sum(p[:, :, None] * x, axis=1)
        m_ref[...] = m_new

        @pl.when(s_idx == pl.num_programs(1) - 1)
        def _():
            inv_l = pl.reciprocal(l_ref[...], approx=True)        # (bt, 1)
            out_ref[...] = (acc_ref[...] * inv_l).astype(out_ref.dtype)

    return kernel


# --------------------------------------------------------------------------
# Tiling / VMEM planning
# --------------------------------------------------------------------------
def _vmem_limit_bytes():
    """Scoped VMEM request: ~3/4 of physical (96 MiB on v5e/v6e, 48 MiB on v7x)."""
    cap = 64 << 20  # conservative fallback (v7x per-core physical VMEM)
    try:
        info = pltpu.get_tpu_info()
        cap = int(getattr(info, "vmem_capacity_bytes", cap))
    except Exception:
        pass
    return max((cap * 3) // 4, 16 << 20)


def _plan_tiling(B, S, F, itemsize, vmem_limit):
    """Pick (bt, sc): batch-block rows and S-chunk length."""
    f32 = 4
    reserve = 4 << 20                              # internal scratch / qk / misc
    budget = max(vmem_limit - reserve, 2 << 20)

    def vmem_use(bt, sc):
        x_db = 2 * bt * sc * F * itemsize          # double-buffered x block
        temps = 2 * bt * sc * F * f32              # broadcast-multiply temporaries
        out_db = 2 * bt * F * itemsize             # double-buffered out block
        acc = bt * F * f32                         # acc scratch
        ml = 2 * ((bt + 7) // 8) * 8 * 128 * f32   # m/l scratch (tile-padded)
        return x_db + temps + out_db + acc + ml

    # Batch-block candidates: bt == B when tiny / already aligned, else
    # multiples of 8 (unmasked sublane stores), else small fallbacks.
    cands = []
    if B <= 8 or B % 8 == 0:
        cands.append(min(B, 512))
    cands += list(range(min((B // 8) * 8, 512), 0, -8))
    cands += [c for c in (4, 2, 1) if c <= B]
    cands = list(dict.fromkeys(c for c in cands if 1 <= c <= B))

    # S-chunk candidates (for the online-softmax fallback): divisors of S that
    # are multiples of 8 (satisfies the (8,128) block rule), else any multiple
    # of 8 with an in-kernel masked tail.
    sc_divs = [d for d in range(S, 0, -1) if S % d == 0 and (d == S or d % 8 == 0)]
    sc_any = list(range(((S - 1) // 8) * 8, 0, -8))

    choice = None
    for bt in cands:                               # largest bt with full S resident
        if vmem_use(bt, S) <= budget:
            choice = (bt, S)
            break
    if choice is None:                             # need S chunking
        for sc_list in (sc_divs, sc_any):
            for bt in cands:
                for sc in sc_list:
                    if sc < S and vmem_use(bt, sc) <= budget:
                        choice = (bt, sc)
                        break
                if choice is not None:
                    break
            if choice is not None:
                break
    if choice is None:
        # Pathological shapes (huge F with tiny S); best effort.
        choice = (1, sc_any[0] if sc_any else S)

    bt, sc = choice
    # Give the pipeline a few grid steps (DMA/compute overlap, work for both
    # v7x TensorCores) as long as each x chunk stays >= ~1 MiB.
    min_chunk = 1 << 20
    while (pl.cdiv(B, bt) * pl.cdiv(S, sc)) < 4:
        smaller = [d for d in sc_divs
                   if d < sc and bt * d * F * itemsize >= min_chunk]
        if not smaller:
            break
        sc = smaller[0]
    return bt, sc


# --------------------------------------------------------------------------
# Wrapper
# --------------------------------------------------------------------------
def attention_pool(x, params):
    """x: (B, S, N, D) (same axis convention as the torch module)."""
    B, S, N, D = x.shape
    F = N * D

    # Fold Wq and the k-half of Wkv into the batch-invariant, pre-scaled query
    # (tiny host-side XLA op).  Dropping the Wkv bias is exact: it adds a
    # per-position constant to prod that cancels in the softmax.
    q = params["q_embed_w"] @ params["wq_w"].T + params["wq_b"]        # (N, D)
    qk = q @ params["wkv_w"][:D]                                       # (N, D)
    qk = (qk / jnp.sqrt(jnp.float32(D))).reshape(1, F).astype(jnp.float32)

    # Free view: lane dimension is F = N*D (no transpose / extra HBM pass).
    # Note: if F is not a multiple of 128 for real model shapes, output stores
    # are lane-masked; pad F in the wrapper if that ever dominates.
    x_flat = x.reshape(B, S, F)

    vmem_limit = _vmem_limit_bytes()
    bt, sc = _plan_tiling(B, S, F, x.dtype.itemsize, vmem_limit)
    grid = (pl.cdiv(B, bt), pl.cdiv(S, sc))

    kernel = _make_kernel(S, sc)

    out_flat = pl.pallas_call(
        kernel,
        out_shape=jax.ShapeDtypeStruct((B, F), x.dtype),
        grid_spec=pltpu.PrefetchScalarGridSpec(
            num_scalar_prefetch=0,
            grid=grid,
            in_specs=[
                pl.BlockSpec((bt, sc, F), lambda b, s: (b, s, 0)),
                pl.BlockSpec((1, F), lambda b, s: (0, 0)),
            ],
            out_specs=pl.BlockSpec((bt, F), lambda b, s: (b, 0)),
            scratch_shapes=[
                pltpu.VMEM((bt, 1), jnp.float32),   # running max m
                pltpu.VMEM((bt, 1), jnp.float32),   # running denom l
                pltpu.VMEM((bt, F), jnp.float32),   # running numerator acc
            ],
        ),
        compiler_params=pltpu.CompilerParams(
            dimension_semantics=("parallel", "arbitrary"),
            vmem_limit_bytes=int(vmem_limit),
        ),
    )(x_flat, qk)

    return out_flat.reshape(B, N, D)


# --------------------------------------------------------------------------
# Pure-JAX reference (direct transcription of the torch forward)
# --------------------------------------------------------------------------
def attention_pool_reference(x, params):
    B, S, N, D = x.shape
    q = params["q_embed_w"] @ params["wq_w"].T + params["wq_b"]           # (N, D)
    kv = jnp.einsum('bsnd,ed->bsne', x, params["wkv_w"]) + params["wkv_b"]
    k = kv[..., :D]
    v = x
    prod = jnp.einsum('nd,bsnd->bs', q, k) / D ** 0.5
    attn = jax.nn.softmax(prod, axis=1)
    return jnp.sum(attn[:, :, None, None] * v, axis=1)                    # (B, N, D)


if __name__ == "__main__":
    B, S, N, D = 2, 8, 4, 32          # batch, seq, n_vars, d
    key = jax.random.PRNGKey(0)
    kx, k1, k2, k3, k4, k5 = jax.random.split(key, 6)
    x = jax.random.normal(kx, (B, S, N, D), dtype=jnp.float32)
    params = {
        "q_embed_w": jax.random.normal(k1, (N, D), dtype=jnp.float32),
        "wq_w":  jax.random.normal(k2, (D, D), dtype=jnp.float32) * 0.1,
        "wq_b":  jax.random.normal(k3, (D,), dtype=jnp.float32) * 0.1,
        "wkv_w": jax.random.normal(k4, (2 * D, D), dtype=jnp.float32) * 0.1,
        "wkv_b": jax.random.normal(k5, (2 * D,), dtype=jnp.float32) * 0.1,
    }

    out = jax.block_until_ready(attention_pool(x, params))
    ref = attention_pool_reference(x, params)

    assert out.shape == (B, N, D), out.shape
    max_err = float(jnp.max(jnp.abs(out - ref)))
    assert jnp.allclose(out, ref, rtol=2e-3, atol=2e-3), max_err
    print("KERNEL_OK")
</pallas_src>

<mosaic_0001>
module attributes {stable_mosaic.version = 11 : i64} {
  func.func @kernel(%arg0: i32, %arg1: i32, %arg2: memref<2x8x128xf32, #tpu.memory_space<vmem>>, %arg3: memref<1x128xf32, #tpu.memory_space<vmem>>, %arg4: memref<2x128xf32, #tpu.memory_space<vmem>>, %arg5: memref<2x1xf32, #tpu.memory_space<vmem>>, %arg6: memref<2x1xf32, #tpu.memory_space<vmem>>, %arg7: memref<2x128xf32, #tpu.memory_space<vmem>>) attributes {dimension_semantics = [#tpu.dimension_semantics<parallel>, #tpu.dimension_semantics<arbitrary>], iteration_bounds = array<i64: 1, 1>, scalar_prefetch = 0 : i64, scratch_operands = 3 : i64, tpu.core_type = #tpu.core_type<tc>, window_params = [{transform_indices = @transform_0, window_bounds = array<i64: 2, 8, 128>}, {pipeline_mode = #tpu.pipeline_mode<synchronous>, transform_indices = @transform_1, window_bounds = array<i64: 1, 128>}, {transform_indices = @transform_2, window_bounds = array<i64: 2, 128>}]} {
    %c0_i32 = arith.constant 0 : i32
    %0 = arith.cmpi eq, %arg1, %c0_i32 : i32
    %1 = arith.extui %0 : i1 to i32
    %c0_i32_0 = arith.constant 0 : i32
    %2 = arith.cmpi ne, %1, %c0_i32_0 : i32
    scf.if %2 {
      %cst_22 = arith.constant 0xFF800000 : f32
      %37 = vector.broadcast %cst_22 : f32 to vector<2x1xf32>
      %c0_23 = arith.constant 0 : index
      %c0_24 = arith.constant 0 : index
      %38 = vector.load %arg5[%c0_23, %c0_24] : memref<2x1xf32, #tpu.memory_space<vmem>>, vector<2x1xf32>
      tpu.vector_store %arg5[%c0_23, %c0_24], %37 {strides = array<i32>} : memref<2x1xf32, #tpu.memory_space<vmem>>, vector<2x1xf32>,
      %cst_25 = arith.constant 0.000000e+00 : f32
      %39 = vector.broadcast %cst_25 : f32 to vector<2x1xf32>
      %c0_26 = arith.constant 0 : index
      %c0_27 = arith.constant 0 : index
      %40 = vector.load %arg6[%c0_26, %c0_27] : memref<2x1xf32, #tpu.memory_space<vmem>>, vector<2x1xf32>
      tpu.vector_store %arg6[%c0_26, %c0_27], %39 {strides = array<i32>} : memref<2x1xf32, #tpu.memory_space<vmem>>, vector<2x1xf32>,
      %cst_28 = arith.constant 0.000000e+00 : f32
      %41 = vector.broadcast %cst_28 : f32 to vector<2x128xf32>
      %c0_29 = arith.constant 0 : index
      %c0_30 = arith.constant 0 : index
      %42 = vector.load %arg7[%c0_29, %c0_30] : memref<2x128xf32, #tpu.memory_space<vmem>>, vector<2x128xf32>
      tpu.vector_store %arg7[%c0_29, %c0_30], %41 {strides = array<i32>} : memref<2x128xf32, #tpu.memory_space<vmem>>, vector<2x128xf32>,
    } else {
    }
    %c0 = arith.constant 0 : index
    %c0_1 = arith.constant 0 : index
    %c0_2 = arith.constant 0 : index
    %3 = vector.load %arg2[%c0, %c0_1, %c0_2] : memref<2x8x128xf32, #tpu.memory_space<vmem>>, vector<2x8x128xf32>
    %c0_3 = arith.constant 0 : index
    %c0_4 = arith.constant 0 : index
    %4 = vector.load %arg3[%c0_3, %c0_4] : memref<1x128xf32, #tpu.memory_space<vmem>>, vector<1x128xf32>
    %5 = vector.shape_cast %4 : vector<1x128xf32> to vector<1x1x128xf32>
    %6 = vector.broadcast %5 : vector<1x1x128xf32> to vector<2x8x128xf32>
    %7 = arith.mulf %3, %6 : vector<2x8x128xf32>
    %cst = arith.constant dense<0.000000e+00> : vector<2x8xf32>
    %8 = vector.multi_reduction <add>, %7, %cst [2] : vector<2x8x128xf32> to vector<2x8xf32>
    %c0_5 = arith.constant 0 : index
    %c0_6 = arith.constant 0 : index
    %9 = vector.load %arg5[%c0_5, %c0_6] : memref<2x1xf32, #tpu.memory_space<vmem>>, vector<2x1xf32>
    %cst_7 = arith.constant dense<0xFF800000> : vector<2xf32>
    %10 = vector.multi_reduction <maximumf>, %8, %cst_7 [1] : vector<2x8xf32> to vector<2xf32>
    %11 = vector.shape_cast %10 : vector<2xf32> to vector<2x1xf32>
    %12 = arith.maximumf %9, %11 : vector<2x1xf32>
    %13 = arith.subf %9, %12 : vector<2x1xf32>
    %14 = math.exp %13 : vector<2x1xf32>
    %15 = vector.broadcast %12 : vector<2x1xf32> to vector<2x8xf32>
    %16 = arith.subf %8, %15 : vector<2x8xf32>
    %17 = math.exp %16 : vector<2x8xf32>
    %c0_8 = arith.constant 0 : index
    %c0_9 = arith.constant 0 : index
    %18 = vector.load %arg6[%c0_8, %c0_9] : memref<2x1xf32, #tpu.memory_space<vmem>>, vector<2x1xf32>
    %19 = arith.mulf %14, %18 : vector<2x1xf32>
    %cst_10 = arith.constant dense<0.000000e+00> : vector<2xf32>
    %20 = vector.multi_reduction <add>, %17, %cst_10 [1] : vector<2x8xf32> to vector<2xf32>
    %21 = vector.shape_cast %20 : vector<2xf32> to vector<2x1xf32>
    %22 = arith.addf %19, %21 : vector<2x1xf32>
    %c0_11 = arith.constant 0 : index
    %c0_12 = arith.constant 0 : index
    %23 = vector.load %arg6[%c0_11, %c0_12] : memref<2x1xf32, #tpu.memory_space<vmem>>, vector<2x1xf32>
    tpu.vector_store %arg6[%c0_11, %c0_12], %22 {strides = array<i32>} : memref<2x1xf32, #tpu.memory_space<vmem>>, vector<2x1xf32>,
    %c0_13 = arith.constant 0 : index
    %c0_14 = arith.constant 0 : index
    %24 = vector.load %arg7[%c0_13, %c0_14] : memref<2x128xf32, #tpu.memory_space<vmem>>, vector<2x128xf32>
    %25 = vector.broadcast %14 : vector<2x1xf32> to vector<2x128xf32>
    %26 = arith.mulf %25, %24 : vector<2x128xf32>
    %27 = vector.shape_cast %17 : vector<2x8xf32> to vector<2x8x1xf32>
    %28 = vector.broadcast %27 : vector<2x8x1xf32> to vector<2x8x128xf32>
    %29 = arith.mulf %28, %3 : vector<2x8x128xf32>
    %cst_15 = arith.constant dense<0.000000e+00> : vector<2x128xf32>
    %30 = vector.multi_reduction <add>, %29, %cst_15 [1] : vector<2x8x128xf32> to vector<2x128xf32>
    %31 = arith.addf %26, %30 : vector<2x128xf32>
    %c0_16 = arith.constant 0 : index
    %c0_17 = arith.constant 0 : index
    %32 = vector.load %arg7[%c0_16, %c0_17] : memref<2x128xf32, #tpu.memory_space<vmem>>, vector<2x128xf32>
    tpu.vector_store %arg7[%c0_16, %c0_17], %31 {strides = array<i32>} : memref<2x128xf32, #tpu.memory_space<vmem>>, vector<2x128xf32>,
    %c0_18 = arith.constant 0 : index
    %c0_19 = arith.constant 0 : index
    %33 = vector.load %arg5[%c0_18, %c0_19] : memref<2x1xf32, #tpu.memory_space<vmem>>, vector<2x1xf32>
    tpu.vector_store %arg5[%c0_18, %c0_19], %12 {strides = array<i32>} : memref<2x1xf32, #tpu.memory_space<vmem>>, vector<2x1xf32>,
    %c0_i32_20 = arith.constant 0 : i32
    %34 = arith.cmpi eq, %arg1, %c0_i32_20 : i32
    %35 = arith.extui %34 : i1 to i32
    %c0_i32_21 = arith.constant 0 : i32
    %36 = arith.cmpi ne, %35, %c0_i32_21 : i32
    scf.if %36 {
      %c0_22 = arith.constant 0 : index
      %c0_23 = arith.constant 0 : index
      %37 = vector.load %arg6[%c0_22, %c0_23] : memref<2x1xf32, #tpu.memory_space<vmem>>, vector<2x1xf32>
      %38 = tpu.reciprocal %37 {approx = true} : vector<2x1xf32> -> vector<2x1xf32>
      %c0_24 = arith.constant 0 : index
      %c0_25 = arith.constant 0 : index
      %39 = vector.load %arg7[%c0_24, %c0_25] : memref<2x128xf32, #tpu.memory_space<vmem>>, vector<2x128xf32>
      %40 = vector.broadcast %38 : vector<2x1xf32> to vector<2x128xf32>
      %41 = arith.mulf %39, %40 : vector<2x128xf32>
      %c0_26 = arith.constant 0 : index
      %c0_27 = arith.constant 0 : index
      %42 = vector.load %arg4[%c0_26, %c0_27] : memref<2x128xf32, #tpu.memory_space<vmem>>, vector<2x128xf32>
      tpu.vector_store %arg4[%c0_26, %c0_27], %41 {strides = array<i32>} : memref<2x128xf32, #tpu.memory_space<vmem>>, vector<2x128xf32>,
    } else {
    }
    return
  }
  func.func @transform_0(%arg0: i32, %arg1: i32) -> (i32, i32, i32) {
    %c0_i32 = arith.constant 0 : i32
    %c0_i32_0 = arith.constant 0 : i32
    return %arg0, %arg1, %c0_i32 : i32, i32, i32
  }
  func.func @transform_1(%arg0: i32, %arg1: i32) -> (i32, i32) {
    %c0_i32 = arith.constant 0 : i32
    %c0_i32_0 = arith.constant 0 : i32
    %c0_i32_1 = arith.constant 0 : i32
    return %c0_i32, %c0_i32_0 : i32, i32
  }
  func.func @transform_2(%arg0: i32, %arg1: i32) -> (i32, i32) {
    %c0_i32 = arith.constant 0 : i32
    %c0_i32_0 = arith.constant 0 : i32
    return %arg0, %c0_i32 : i32, i32
  }
}

</mosaic_0001>

<bundles_post_ra>
// kernel: tpu_custom_call.1
= control target key start
LH: loop header
LB: loop body
LE: loop exit
PB: predicated region body
PF: predicated region fallthrough
CT: control target
= control target key end

     0   :  { %7 = vsyncpa [#allocation6], 0  ;;  %s301_s0 = inlined_call_operand.hbm [shape: f32[2,8,128], index: 0, kind: input, shape index: {}]   ;;  %s302_s1 = inlined_call_operand.vmem [shape: f32[1,128], index: 1, kind: input, shape index: {}]   ;;  %s303_s2 = inlined_call_operand.hbm [shape: f32[2,128], index: 2, kind: output, shape index: {}]  }
   0x1   :  { %8 = vsyncpa [#allocation7], 0  ;;  %s243_s9 = smov [#allocation5]   ;;  %s195_s13 = scalar_lea.hbm %s301_s0, 256 }
   0x2   :  { %s14_s10 = sshll.u32 %s243_s9, 4  ;;  %p196_p0 = scmp.ne.s32.totalorder %s301_s0, %s195_s13  ;;  %s15_s10 = int_to_ptr.vmem [resolvable:$true] %s14_s10 }
   0x3   :  { %p199_p1 = scmp.lt.u32.totalorder %s195_s13, %s301_s0 }
   0x5   :  { %p201_p2 = pnand %p199_p1, %p196_p0 }
   0x7   :  { %204 = shalt.err (!%p201_p2)
}
   0x8   :  { %s205_s18 = scalar_lea.vmem %s15_s10, 256  ;;  %p210_p4 = scmp.lt.s32.totalorder %s15_s10, %s15_s10 }
   0x9   :  { %p206_p3 = scmp.ne.s32.totalorder %s15_s10, %s205_s18  ;;  %p211_p5 = scmp.lt.s32.totalorder %s205_s18, %s205_s18 }
   0xb   :  { %p212_p6 = por %p211_p5, %p210_p4 }
   0xd   :  { %p213_p7 = pnand %p212_p6, %p206_p3 }
   0xf   :  { %216 = shalt.err (!%p213_p7)
}
  0x10   :  { %s244_s19 = smov 128   ;;  %s245_s20 = smov 8  }
  0x11   :  { %20 = dma.hbm_to_vmem [thread:$0]  %s301_s0, 256, %s15_s10, [#allocation6], %s244_s19, %s244_s19, %s245_s20  }
  0x12   :  { %239 = dma.done.wait [#allocation6], 256  }
  0x13   :  { %240 = vsyncadd [#allocation6], 4294967040  ;;  %v34_v0 = vld [vmem:[#allocation5] sm:$0xff]  ;;  %v177_v1 = vld [vmem:[%s302_s1] ss:$0 sm:$0xff]  ;;  %vm30_vm0 = vcmask 1024   ;;  %v52_v6 = vlaneseq }
  0x14   :  { %v35_v2 = vld [vmem:[#allocation5 + $0x8] sm:$0xff]  ;;  %v43_v3 = vmul.f32 %v177_v1, %v34_v0  ;;  %v246_v5 = vmov -inf   ;;  %vm62_vm1 = vcmask 1041409   ;;  %vm65_vm2 = vcmask 58368   ;;  %s249_s0 = smov [#allocation8]  }
  0x15   :  { %v44_v4 = vmul.f32 %v177_v1, %v35_v2  ;;  %31 = vst.msk [vmem:[#allocation2] sm:$0x3] %vm30_vm0, %v246_v5  ;;  %v53_v7 = vand.u32 127, %v52_v6  ;;  %v55_v8 = vshrl.u32 %v52_v6, 7  ;;  %v247_v16 = vmov 0   ;;  %s168_s1 = sshll.u32 %s249_s0, 4  ;;  %s169_s1 = int_to_ptr.vmem [resolvable:$true] %s168_s1 }
  0x16   :  { %45 = vadd.xlane.f32.xlu0 %v43_v3  ;;  %185 = vset.pattern.permute.xlu1 %v247_v16  ;;  %v248_v17 = vmov 0.0   ;;  %s217_s25 = scalar_lea.vmem %s169_s1, 32  ;;  %p222_p9 = scmp.lt.s32.totalorder %s169_s1, %s169_s1 }
  0x17   :  { %v56_v10 = vsub.s32 %v53_v7, %v55_v8  ;;  %186 = vset.pattern.permute.xlu0 %v247_v16  ;;  %32 = vst.msk [vmem:[#allocation3] sm:$0x3] %vm30_vm0, %v248_v17  ;;  %33 = vst [vmem:[#allocation4] sm:$0x3] %v248_v17  ;;  %v79_v22 = vsub.s32 0, %v55_v8  ;;  %v83_v23 = vsub.s32 1, %v55_v8  ;;  %p218_p8 = scmp.ne.s32.totalorder %s169_s1, %s217_s25  ;;  %p223_p10 = scmp.lt.s32.totalorder %s217_s25, %s217_s25 }
  0x19   :  { %p224_p11 = por %p223_p10, %p222_p9 }
  0x1a   :  { %47 = vadd.xlane.f32.xlu0 %v44_v4 }
  0x1b   :  { %p225_p12 = pnand %p224_p11, %p218_p8 }
  0x1c   :  { %v49_v18 = vld [vmem:[#allocation2] sm:$0x3] }
  0x1e   :  { %v119_v53 = vld [vmem:[#allocation4] sm:$0x3]  ;;  %v93_v60 = vld [vmem:[#allocation3] sm:$0x3] }
  0xa3   :  { %v46_v9 = vpop.xlane.xlu0 %45 }
  0xa4   :  { %v57_v12 = vrot.slane %v46_v9, %v56_v10 }
  0xa7   :  { %v48_v11 = vpop.xlane.xlu0 %47 }
  0xa8   :  { %v61_v13 = vrot.slane %v48_v11, %v56_v10 }
  0xaa   :  { %v63_v14 = vsel %vm62_vm1, %v61_v13, %v57_v12 }
  0xab   :  { %v66_v15 = vsel %vm65_vm2, %v63_v14, -inf }
  0xac   :  { %67 = vmax.xlane.f32.xlu1 %v66_v15 }
 0x139   :  { %v68_v19 = vpop.xlane.xlu1 %67 }
 0x13a   :  { %v69_v20 = vmax.f32 %v49_v18, %v68_v19 }
 0x13c   :  { %v70_v21 = vsub.f32 %v49_v18, %v69_v20  ;;  %148 = vst.msk [vmem:[#allocation2] sm:$0x3] %vm30_vm0, %v69_v20  ;;  %75 = vperm.xlu1 %185, %v69_v20  }
 0x13e   :  { %v71_v31 = vmul.f32 1.442695, %v70_v21 }
 0x1bb   :  { %v76_v24 = vpop.permute.xlu1 %75 }
 0x1bc   :  { %v80_v25 = vrot.slane %v76_v24, %v79_v22  ;;  %v84_v26 = vrot.slane %v76_v24, %v83_v23 }
 0x1be   :  { %v87_v27 = vsub.f32 %v46_v9, %v80_v25  ;;  %v88_v28 = vsub.f32 %v48_v11, %v84_v26 }
 0x1c0   :  { %v89_v29 = vmul.f32 1.442695, %v87_v27  ;;  %v91_v30 = vmul.f32 1.442695, %v88_v28 }
 0x1c2   :  { %187 = vpow2.f32 %v89_v29 }
 0x1c3   :  { %189 = vpow2.f32 %v91_v30 }
 0x1c4   :  { %191 = vpow2.f32 %v71_v31 }
 0x1cc   :  { %v188_v32 = vpop.eup %187 }
 0x1cd   :  { %v190_v33 = vpop.eup %189  ;;  %98 = vperm.xlu0 %186, %v188_v32  }
 0x1ce   :  { %101 = vperm.xlu1 %185, %v190_v33   ;;  %v192_v34 = vpop.eup %191 }
 0x1cf   :  { %v94_v61 = vmul.f32 %v192_v34, %v93_v60 }
 0x1d1   :  { %122 = vperm.xlu0 %186, %v192_v34  }
 0x24c   :  { %v99_v35 = vpop.permute.xlu0 %98 }
 0x24d   :  { %v102_v36 = vpop.permute.xlu1 %101  ;;  %v106_v37 = vrot.slane %v99_v35, %v56_v10  ;;  %v128_v38 = vmul.f32 %v99_v35, %v34_v0 }
 0x24e   :  { %v110_v39 = vrot.slane %v102_v36, %v56_v10  ;;  %v129_v40 = vmul.f32 %v102_v36, %v35_v2 }
 0x24f   :  { %v130_v41 = vrot.slane %v128_v38, 4 }
 0x250   :  { %v136_v42 = vrot.slane %v129_v40, 4  ;;  %v111_v43 = vsel %vm62_vm1, %v110_v39, %v106_v37  ;;  %v123_v54 = vpop.permute.xlu0 %122 }
 0x251   :  { %v131_v44 = vadd.f32 %v130_v41, %v128_v38  ;;  %v113_v45 = vsel %vm65_vm2, %v111_v43, 0.0  ;;  %v125_v57 = vmul.f32 %v123_v54, %v119_v53 }
 0x252   :  { %v137_v46 = vadd.f32 %v136_v42, %v129_v40  ;;  %114 = vadd.xlane.f32.xlu1 %v113_v45 }
 0x253   :  { %v132_v47 = vrot.slane %v131_v44, 2 }
 0x254   :  { %v138_v48 = vrot.slane %v137_v46, 2 }
 0x255   :  { %v133_v49 = vadd.f32 %v132_v47, %v131_v44 }
 0x256   :  { %v139_v50 = vadd.f32 %v138_v48, %v137_v46 }
 0x257   :  { %v134_v51 = vrot.slane %v133_v49, 1 }
 0x258   :  { %v140_v52 = vrot.slane %v139_v50, 1 }
 0x259   :  { %v135_v55 = vadd.f32 %v134_v51, %v133_v49 }
 0x25a   :  { %v141_v56 = vadd.f32 %v140_v52, %v139_v50 }
 0x25c   :  { %v144_v58 = vsel %vm62_vm1, %v141_v56, %v135_v55 }
 0x25d   :  { %v146_v59 = vadd.f32 %v144_v58, %v125_v57 }
 0x25f   :  { %147 = vst [vmem:[#allocation4] sm:$0x3] %v146_v59 }
 0x266   :  { %v154_v2 = vld [vmem:[#allocation4] sm:$0x3] }
 0x2df   :  { %v115_v62 = vpop.xlane.xlu1 %114 }
 0x2e0   :  { %v116_v63 = vadd.f32 %v115_v62, %v94_v61 }
 0x2e2   :  { %118 = vst.msk [vmem:[#allocation3] sm:$0x3] %vm30_vm0, %v116_v63 }
 0x2e9   :  { %v152_v0 = vld [vmem:[#allocation3] sm:$0x3] }
 0x2ea   :  { %193 = vrcp.f32 %v152_v0 }
 0x2f4   :  { %v194_v1 = vpop.eup %193 }
 0x2f5   :  { %157 = vperm.xlu0 %186, %v194_v1  }
 0x374   :  { %v158_v3 = vpop.permute.xlu0 %157 }
 0x375   :  { %v160_v4 = vmul.f32 %v158_v3, %v154_v2 }
 0x377   :  { %161 = vst [vmem:[#allocation8] sm:$0x3] %v160_v4 }
 0x378   :  { %228 = shalt.err (!%p225_p12)
}
 0x379   :  { %s229_s28 = scalar_lea.hbm %s303_s2, 32 }
 0x37a   :  { %p230_p13 = scmp.ne.s32.totalorder %s303_s2, %s229_s28  ;;  %p233_p0 = scmp.lt.u32.totalorder %s229_s28, %s303_s2 }
 0x37c   :  { %p235_p1 = pnand %p233_p0, %p230_p13 }
 0x37e   :  { %238 = shalt.err (!%p235_p1)
}
 0x37f   :  { %171 = dma.vmem_to_hbm [thread:$0]  %s169_s1, 32, %s303_s2, [#allocation7]  }
 0x380   :  { %241 = dma.done.wait [#allocation7], 32  }
 0x381   :  { %242 = vsyncadd [#allocation7], 4294967264 }
 0x382   :  { %175 = vsyncpa [#allocation6], 1 }
 0x383   :  { %176 = vsyncpa [#allocation7], 1 }

</bundles_post_ra>
